<compile_context>
chip_gen: v7x
topology: tpu7x:2x2x1
jax: 0.10.0
libtpu: 0.0.40
codegen_flags: <defaults>
</compile_context>

<pallas_src>
import jax
import jax.numpy as jnp
from jax.experimental import pallas as pl
from jax.experimental.pallas import tpu as pltpu


def _sentence_repr_kernel(seq_ref, mask_ref, w_ref, out_ref, m_sc, l_sc, acc_sc):
    """Grid step (i, j): batch tile i, sequence chunk j (online softmax over j).

    seq_ref : (Bt, Ts, H) VMEM, native input dtype
    mask_ref: (Bt, Ts)    VMEM, int32 (1 keep, 0 masked -> -1e9, <0 S-padding)
    w_ref   : (1, 1, H)   VMEM, native input dtype (row of nn.Linear(H,1).weight)
    out_ref : (Bt, H)     VMEM, native input dtype
    m_sc    : (Bt, 1) f32 running max
    l_sc    : (Bt, 1) f32 running denominator
    acc_sc  : (Bt, H) f32 running weighted sum
    """
    j = pl.program_id(1)

    @pl.when(j == 0)
    def _():
        m_sc[...] = jnp.full(m_sc.shape, -jnp.inf, dtype=m_sc.dtype)
        l_sc[...] = jnp.zeros(l_sc.shape, dtype=l_sc.dtype)
        acc_sc[...] = jnp.zeros(acc_sc.shape, dtype=acc_sc.dtype)

    seq = seq_ref[...]                                           # (Bt, Ts, H) native
    mk = mask_ref[...]                                           # (Bt, Ts) int32

    # scores[b, s] = sum_h seq[b, s, h] * w[h]
    # Multiply in native dtype (bf16 VPU on v6e/v7x), accumulate in f32.
    scores = jnp.sum(seq * w_ref[...], axis=-1, dtype=jnp.float32)   # (Bt, Ts)
    scores = jnp.where(mk == 0, jnp.float32(-1e9), scores)           # masked_fill
    scores = jnp.where(mk < 0, -jnp.inf, scores)                     # S padding: ignore

    # Online-softmax update across S chunks.
    m_prev = m_sc[...]                                               # (Bt, 1)
    m_new = jnp.maximum(m_prev, jnp.max(scores, axis=-1, keepdims=True))
    alpha = jnp.exp(m_prev - m_new)                                  # (Bt, 1)
    p = jnp.exp(scores - m_new)                                      # (Bt, Ts)
    l_sc[...] = alpha * l_sc[...] + jnp.sum(p, axis=-1, keepdims=True)

    # partial pooled[b, h] = sum_s p[b, s] * seq[b, s, h]
    part = jnp.sum(seq * p.astype(seq.dtype)[:, :, jnp.newaxis],
                   axis=1, dtype=jnp.float32)                        # (Bt, H)
    acc_sc[...] = alpha * acc_sc[...] + part
    m_sc[...] = m_new

    @pl.when(j == pl.num_programs(1) - 1)
    def _():
        inv = pl.reciprocal(l_sc[...], approx=False)                 # (Bt, 1)
        out_ref[...] = (acc_sc[...] * inv).astype(out_ref.dtype)


def _round_up(x, m):
    return ((x + m - 1) // m) * m


def _vmem_capacity_bytes():
    try:
        return int(pltpu.get_tpu_info().vmem_capacity_bytes)
    except Exception:
        return 64 << 20          # conservative fallback: v7x per-TensorCore VMEM


def _choose_tiles(B, S, H, itemsize, vmem_cap):
    """Pick (Bt, Ts, B_pad, S_pad): batch tile, S chunk, padded batch, padded S."""
    # Raw-slab budget ~1/16 of VMEM capacity, clamped to [1, 8] MiB. Working set
    # is roughly 2x (double-buffered DMA) + ~3x (in-kernel temporaries) the slab.
    slab_budget = int(min(max(vmem_cap // 16, 1 << 20), 8 << 20))
    row_bytes = S * H * itemsize
    if 8 * row_bytes <= slab_budget:
        # Common case: full S per step, tile only the batch.
        ts, s_pad = S, S
        bt = max(8, min((slab_budget // row_bytes) // 8 * 8, _round_up(B, 8)))
        if B > 8:
            # Prefer multiple (>=4 when batch allows) grid steps so the megacore
            # "parallel" split leaves each TensorCore a double-buffered pipeline.
            bt = min(bt, max(8, (B // 4) // 8 * 8))
        b_pad = _round_up(B, bt)
    else:
        # Long-context fallback: chunk S, online softmax over the inner axis.
        ts = max(128, (slab_budget // (8 * H * itemsize)) // 128 * 128)
        bt = max(8, min((slab_budget // (ts * H * itemsize)) // 8 * 8,
                        _round_up(B, 8)))
        s_pad = _round_up(S, ts)
        b_pad = _round_up(B, bt)
        # TODO(synk): extremely large H (a single (8, 128, H) chunk exceeding
        # VMEM) would additionally need an H-chunked accumulation.
    return bt, ts, b_pad, s_pad


def sentence_representation(sequence_output, attention_mask, weight, bias=None):
    """
    sequence_output: [B, S, H] (any float dtype; streamed in native dtype)
    attention_mask : [B, S]    (0 == masked/padded token)
    weight         : [1, H]    (nn.Linear(H, 1).weight)
    bias           : [1]       accepted for API parity but unused: softmax is
                               invariant to a constant shift of the logits.
    returns        : [B, H] in sequence_output.dtype
    """
    del bias  # no-op under softmax (masked positions overwritten regardless)
    B, S, H = sequence_output.shape
    seq = sequence_output                       # keep native dtype, no upcast
    mask = attention_mask.astype(jnp.int32)

    itemsize = jnp.dtype(seq.dtype).itemsize
    vmem_cap = _vmem_capacity_bytes()
    bt, ts, b_pad, s_pad = _choose_tiles(B, S, H, itemsize, vmem_cap)

    if b_pad != B:
        seq = jnp.pad(seq, ((0, b_pad - B), (0, 0), (0, 0)))
        mask = jnp.pad(mask, ((0, b_pad - B), (0, 0)))           # 0 == fully masked
    if s_pad != S:
        seq = jnp.pad(seq, ((0, 0), (0, s_pad - S), (0, 0)))
        mask = jnp.pad(mask, ((0, 0), (0, s_pad - S)), constant_values=-1)

    w = weight.astype(seq.dtype).reshape(1, 1, H)

    grid = (b_pad // bt, s_pad // ts)

    # Generation-aware VMEM limit: double-buffered slabs + native-dtype products
    # + f32 widening headroom, clamped safely below physical capacity.
    block_elems = bt * ts * H
    block_bytes = block_elems * itemsize
    vmem_need = (2 * block_bytes              # double-buffered seq slabs
                 + 2 * block_bytes            # native-dtype products (seq*w, seq*p)
                 + block_elems * 4            # f32 widening headroom in reductions
                 + 4 * bt * ts * 4            # mask buffers + scores / p
                 + 4 * bt * H * 4             # out buffers + f32 acc scratch
                 + 4 * bt * 4)                # m / l scratch
    vmem_limit = int(min(vmem_need + (8 << 20), vmem_cap - (8 << 20)))
    vmem_limit = max(vmem_limit, 16 << 20)

    grid_spec = pltpu.PrefetchScalarGridSpec(
        num_scalar_prefetch=0,
        grid=grid,
        in_specs=[
            pl.BlockSpec((bt, ts, H), lambda i, j: (i, j, 0)),   # seq chunk
            pl.BlockSpec((bt, ts), lambda i, j: (i, j)),         # mask chunk
            pl.BlockSpec((1, 1, H), lambda i, j: (0, 0, 0)),     # weight row
        ],
        out_specs=pl.BlockSpec((bt, H), lambda i, j: (i, 0)),
        scratch_shapes=[
            pltpu.VMEM((bt, 1), jnp.float32),    # running max
            pltpu.VMEM((bt, 1), jnp.float32),    # running denominator
            pltpu.VMEM((bt, H), jnp.float32),    # running weighted sum
        ],
    )

    out = pl.pallas_call(
        _sentence_repr_kernel,
        out_shape=jax.ShapeDtypeStruct((b_pad, H), sequence_output.dtype),
        grid_spec=grid_spec,
        compiler_params=pltpu.CompilerParams(
            dimension_semantics=("parallel", "arbitrary"),
            vmem_limit_bytes=vmem_limit),
    )(seq, mask, w)

    return out[:B]


def _reference(sequence_output, attention_mask, weight, bias):
    # Pure-JAX reference mirroring the PyTorch forward (including the bias).
    seq = sequence_output.astype(jnp.float32)
    scores = jnp.einsum("bsh,oh->bs", seq, weight.astype(jnp.float32))
    scores = scores + bias.astype(jnp.float32)[0]
    scores = jnp.where(attention_mask == 0, -1e9, scores)
    attn = jax.nn.softmax(scores, axis=-1)
    return jnp.einsum("bs,bsh->bh", attn, seq)


if __name__ == "__main__":
    B, S, H = 16, 8, 32
    key = jax.random.PRNGKey(0)
    k1, k2, k3, k4 = jax.random.split(key, 4)

    sequence_output = jax.random.normal(k1, (B, S, H), dtype=jnp.float32)
    # mask: varying number of valid (leading) tokens per row, rest padded.
    lengths = 1 + (jnp.arange(B) % S)
    attention_mask = (jnp.arange(S)[None, :] < lengths[:, None]).astype(jnp.int32)

    # Deterministic "Linear(hidden_size, 1)" parameters.
    weight = jax.random.normal(k3, (1, H), dtype=jnp.float32) * 0.1
    bias = jax.random.normal(k4, (1,), dtype=jnp.float32) * 0.1

    out = sentence_representation(sequence_output, attention_mask, weight, bias)
    out = jax.block_until_ready(out)

    ref = _reference(sequence_output, attention_mask, weight, bias)
    assert out.shape == (B, H)
    assert jnp.allclose(out, ref.astype(out.dtype), atol=1e-5, rtol=1e-5), (out, ref)

    print("KERNEL_OK")
</pallas_src>

<mosaic_0001>
module attributes {stable_mosaic.version = 11 : i64} {
  func.func @_sentence_repr_kernel(%arg0: i32, %arg1: i32, %arg2: memref<8x8x32xf32, #tpu.memory_space<vmem>>, %arg3: memref<8x8xi32, #tpu.memory_space<vmem>>, %arg4: memref<1x1x32xf32, #tpu.memory_space<vmem>>, %arg5: memref<8x32xf32, #tpu.memory_space<vmem>>, %arg6: memref<8x1xf32, #tpu.memory_space<vmem>>, %arg7: memref<8x1xf32, #tpu.memory_space<vmem>>, %arg8: memref<8x32xf32, #tpu.memory_space<vmem>>) attributes {dimension_semantics = [#tpu.dimension_semantics<parallel>, #tpu.dimension_semantics<arbitrary>], iteration_bounds = array<i64: 2, 1>, scalar_prefetch = 0 : i64, scratch_operands = 3 : i64, tpu.core_type = #tpu.core_type<tc>, window_params = [{transform_indices = @transform_0, window_bounds = array<i64: 8, 8, 32>}, {transform_indices = @transform_1, window_bounds = array<i64: 8, 8>}, {pipeline_mode = #tpu.pipeline_mode<synchronous>, transform_indices = @transform_2, window_bounds = array<i64: 1, 1, 32>}, {transform_indices = @transform_3, window_bounds = array<i64: 8, 32>}]} {
    %c0_i32 = arith.constant 0 : i32
    %0 = arith.cmpi eq, %arg1, %c0_i32 : i32
    %1 = arith.extui %0 : i1 to i32
    %c0_i32_0 = arith.constant 0 : i32
    %2 = arith.cmpi ne, %1, %c0_i32_0 : i32
    scf.if %2 {
      %cst_29 = arith.constant 0xFF800000 : f32
      %45 = vector.broadcast %cst_29 : f32 to vector<8x1xf32>
      %c0_30 = arith.constant 0 : index
      %c0_31 = arith.constant 0 : index
      %46 = vector.load %arg6[%c0_30, %c0_31] : memref<8x1xf32, #tpu.memory_space<vmem>>, vector<8x1xf32>
      tpu.vector_store %arg6[%c0_30, %c0_31], %45 {strides = array<i32>} : memref<8x1xf32, #tpu.memory_space<vmem>>, vector<8x1xf32>,
      %cst_32 = arith.constant 0.000000e+00 : f32
      %47 = vector.broadcast %cst_32 : f32 to vector<8x1xf32>
      %c0_33 = arith.constant 0 : index
      %c0_34 = arith.constant 0 : index
      %48 = vector.load %arg7[%c0_33, %c0_34] : memref<8x1xf32, #tpu.memory_space<vmem>>, vector<8x1xf32>
      tpu.vector_store %arg7[%c0_33, %c0_34], %47 {strides = array<i32>} : memref<8x1xf32, #tpu.memory_space<vmem>>, vector<8x1xf32>,
      %cst_35 = arith.constant 0.000000e+00 : f32
      %49 = vector.broadcast %cst_35 : f32 to vector<8x32xf32>
      %c0_36 = arith.constant 0 : index
      %c0_37 = arith.constant 0 : index
      %50 = vector.load %arg8[%c0_36, %c0_37] : memref<8x32xf32, #tpu.memory_space<vmem>>, vector<8x32xf32>
      tpu.vector_store %arg8[%c0_36, %c0_37], %49 {strides = array<i32>} : memref<8x32xf32, #tpu.memory_space<vmem>>, vector<8x32xf32>,
    } else {
    }
    %c0 = arith.constant 0 : index
    %c0_1 = arith.constant 0 : index
    %c0_2 = arith.constant 0 : index
    %3 = vector.load %arg2[%c0, %c0_1, %c0_2] : memref<8x8x32xf32, #tpu.memory_space<vmem>>, vector<8x8x32xf32>
    %c0_3 = arith.constant 0 : index
    %c0_4 = arith.constant 0 : index
    %4 = vector.load %arg3[%c0_3, %c0_4] : memref<8x8xi32, #tpu.memory_space<vmem>>, vector<8x8xi32>
    %c0_5 = arith.constant 0 : index
    %c0_6 = arith.constant 0 : index
    %c0_7 = arith.constant 0 : index
    %5 = vector.load %arg4[%c0_5, %c0_6, %c0_7] : memref<1x1x32xf32, #tpu.memory_space<vmem>>, vector<1x1x32xf32>
    %6 = vector.broadcast %5 : vector<1x1x32xf32> to vector<8x8x32xf32>
    %7 = arith.mulf %3, %6 : vector<8x8x32xf32>
    %cst = arith.constant dense<0.000000e+00> : vector<8x8xf32>
    %8 = vector.multi_reduction <add>, %7, %cst [2] : vector<8x8x32xf32> to vector<8x8xf32>
    %c0_i32_8 = arith.constant 0 : i32
    %9 = vector.broadcast %c0_i32_8 : i32 to vector<8x8xi32>
    %10 = arith.cmpi eq, %4, %9 : vector<8x8xi32>
    %cst_9 = arith.constant -1.000000e+09 : f32
    %11 = vector.broadcast %cst_9 : f32 to vector<8x8xf32>
    %12 = arith.select %10, %11, %8 : vector<8x8xi1>, vector<8x8xf32>
    %c0_i32_10 = arith.constant 0 : i32
    %13 = vector.broadcast %c0_i32_10 : i32 to vector<8x8xi32>
    %14 = arith.cmpi slt, %4, %13 : vector<8x8xi32>
    %cst_11 = arith.constant 0xFF800000 : f32
    %15 = vector.broadcast %cst_11 : f32 to vector<8x8xf32>
    %16 = arith.select %14, %15, %12 : vector<8x8xi1>, vector<8x8xf32>
    %c0_12 = arith.constant 0 : index
    %c0_13 = arith.constant 0 : index
    %17 = vector.load %arg6[%c0_12, %c0_13] : memref<8x1xf32, #tpu.memory_space<vmem>>, vector<8x1xf32>
    %cst_14 = arith.constant dense<0xFF800000> : vector<8xf32>
    %18 = vector.multi_reduction <maximumf>, %16, %cst_14 [1] : vector<8x8xf32> to vector<8xf32>
    %19 = vector.shape_cast %18 : vector<8xf32> to vector<8x1xf32>
    %20 = arith.maximumf %17, %19 : vector<8x1xf32>
    %21 = arith.subf %17, %20 : vector<8x1xf32>
    %22 = math.exp %21 : vector<8x1xf32>
    %23 = vector.broadcast %20 : vector<8x1xf32> to vector<8x8xf32>
    %24 = arith.subf %16, %23 : vector<8x8xf32>
    %25 = math.exp %24 : vector<8x8xf32>
    %c0_15 = arith.constant 0 : index
    %c0_16 = arith.constant 0 : index
    %26 = vector.load %arg7[%c0_15, %c0_16] : memref<8x1xf32, #tpu.memory_space<vmem>>, vector<8x1xf32>
    %27 = arith.mulf %22, %26 : vector<8x1xf32>
    %cst_17 = arith.constant dense<0.000000e+00> : vector<8xf32>
    %28 = vector.multi_reduction <add>, %25, %cst_17 [1] : vector<8x8xf32> to vector<8xf32>
    %29 = vector.shape_cast %28 : vector<8xf32> to vector<8x1xf32>
    %30 = arith.addf %27, %29 : vector<8x1xf32>
    %c0_18 = arith.constant 0 : index
    %c0_19 = arith.constant 0 : index
    %31 = vector.load %arg7[%c0_18, %c0_19] : memref<8x1xf32, #tpu.memory_space<vmem>>, vector<8x1xf32>
    tpu.vector_store %arg7[%c0_18, %c0_19], %30 {strides = array<i32>} : memref<8x1xf32, #tpu.memory_space<vmem>>, vector<8x1xf32>,
    %32 = vector.shape_cast %25 : vector<8x8xf32> to vector<8x8x1xf32>
    %33 = vector.broadcast %32 : vector<8x8x1xf32> to vector<8x8x32xf32>
    %34 = arith.mulf %3, %33 : vector<8x8x32xf32>
    %cst_20 = arith.constant dense<0.000000e+00> : vector<8x32xf32>
    %35 = vector.multi_reduction <add>, %34, %cst_20 [1] : vector<8x8x32xf32> to vector<8x32xf32>
    %c0_21 = arith.constant 0 : index
    %c0_22 = arith.constant 0 : index
    %36 = vector.load %arg8[%c0_21, %c0_22] : memref<8x32xf32, #tpu.memory_space<vmem>>, vector<8x32xf32>
    %37 = vector.broadcast %22 : vector<8x1xf32> to vector<8x32xf32>
    %38 = arith.mulf %37, %36 : vector<8x32xf32>
    %39 = arith.addf %38, %35 : vector<8x32xf32>
    %c0_23 = arith.constant 0 : index
    %c0_24 = arith.constant 0 : index
    %40 = vector.load %arg8[%c0_23, %c0_24] : memref<8x32xf32, #tpu.memory_space<vmem>>, vector<8x32xf32>
    tpu.vector_store %arg8[%c0_23, %c0_24], %39 {strides = array<i32>} : memref<8x32xf32, #tpu.memory_space<vmem>>, vector<8x32xf32>,
    %c0_25 = arith.constant 0 : index
    %c0_26 = arith.constant 0 : index
    %41 = vector.load %arg6[%c0_25, %c0_26] : memref<8x1xf32, #tpu.memory_space<vmem>>, vector<8x1xf32>
    tpu.vector_store %arg6[%c0_25, %c0_26], %20 {strides = array<i32>} : memref<8x1xf32, #tpu.memory_space<vmem>>, vector<8x1xf32>,
    %c0_i32_27 = arith.constant 0 : i32
    %42 = arith.cmpi eq, %arg1, %c0_i32_27 : i32
    %43 = arith.extui %42 : i1 to i32
    %c0_i32_28 = arith.constant 0 : i32
    %44 = arith.cmpi ne, %43, %c0_i32_28 : i32
    scf.if %44 {
      %c0_29 = arith.constant 0 : index
      %c0_30 = arith.constant 0 : index
      %45 = vector.load %arg7[%c0_29, %c0_30] : memref<8x1xf32, #tpu.memory_space<vmem>>, vector<8x1xf32>
      %46 = tpu.reciprocal %45 : vector<8x1xf32> -> vector<8x1xf32>
      %c0_31 = arith.constant 0 : index
      %c0_32 = arith.constant 0 : index
      %47 = vector.load %arg8[%c0_31, %c0_32] : memref<8x32xf32, #tpu.memory_space<vmem>>, vector<8x32xf32>
      %48 = vector.broadcast %46 : vector<8x1xf32> to vector<8x32xf32>
      %49 = arith.mulf %47, %48 : vector<8x32xf32>
      %c0_33 = arith.constant 0 : index
      %c0_34 = arith.constant 0 : index
      %50 = vector.load %arg5[%c0_33, %c0_34] : memref<8x32xf32, #tpu.memory_space<vmem>>, vector<8x32xf32>
      tpu.vector_store %arg5[%c0_33, %c0_34], %49 {strides = array<i32>} : memref<8x32xf32, #tpu.memory_space<vmem>>, vector<8x32xf32>,
    } else {
    }
    return
  }
  func.func @transform_0(%arg0: i32, %arg1: i32) -> (i32, i32, i32) {
    %c0_i32 = arith.constant 0 : i32
    %c0_i32_0 = arith.constant 0 : i32
    return %arg0, %arg1, %c0_i32 : i32, i32, i32
  }
  func.func @transform_1(%arg0: i32, %arg1: i32) -> (i32, i32) {
    %c0_i32 = arith.constant 0 : i32
    return %arg0, %arg1 : i32, i32
  }
  func.func @transform_2(%arg0: i32, %arg1: i32) -> (i32, i32, i32) {
    %c0_i32 = arith.constant 0 : i32
    %c0_i32_0 = arith.constant 0 : i32
    %c0_i32_1 = arith.constant 0 : i32
    %c0_i32_2 = arith.constant 0 : i32
    return %c0_i32, %c0_i32_0, %c0_i32_1 : i32, i32, i32
  }
  func.func @transform_3(%arg0: i32, %arg1: i32) -> (i32, i32) {
    %c0_i32 = arith.constant 0 : i32
    %c0_i32_0 = arith.constant 0 : i32
    return %arg0, %c0_i32 : i32, i32
  }
}

</mosaic_0001>

<bundles_post_ra>
// kernel: tpu_custom_call.1
= control target key start
LH: loop header
LB: loop body
LE: loop exit
PB: predicated region body
PF: predicated region fallthrough
CT: control target
= control target key end

     0   :  { %8 = vsyncpa [#allocation6], 0  ;;  %s1142_s0 = inlined_call_operand.hbm [shape: f32[16,8,32], index: 0, kind: input, shape index: {}]   ;;  %s1143_s1 = inlined_call_operand.vmem [shape: s32[16,8], index: 1, kind: input, shape index: {}]   ;;  %s1144_s2 = inlined_call_operand.vmem [shape: f32[1,1,32], index: 2, kind: input, shape index: {}]   ;;  %s1145_s3 = inlined_call_operand.hbm [shape: f32[16,32], index: 3, kind: output, shape index: {}]  }
   0x1   :  { %10 = vsyncpa [#allocation6 + $0x1], 0 }
   0x2   :  { %11 = vsyncpa [#allocation7], 0 }
   0x3   :  { %13 = vsyncpa [#allocation7 + $0x1], 0  ;;  %s878_s12 = smov 0   ;;  %s880_s13 = smov 0  }
   0x4   :  { %s882_s14 = smov 0   ;;  %s884_s15 = smov 0  }
   0x5   :  { %s886_s16 = smov 0   ;;  %s888_s17 = smov 0  }
   0x6 LB: > { %s645_s18 = sadd.s32 4294967295, %s849_s17   ;;  %s646_s19 = sadd.s32 4294967294, %s849_s17   ;;  %s849_s17 = sphi %s888_s17, %s19_s17   ;;  %s845_s16 = sphi %s886_s16, %s1160_s16   ;;  %s841_s15 = sphi %s884_s15, %s1159_s15   ;;  %s837_s14 = sphi %s882_s14, %s1158_s14   ;;  %s833_s13 = sphi %s880_s13, %s1157_s13   ;;  %s829_s12 = sphi %s878_s12, %s1156_s12  }
   0x7   : > { %s31_s20 = sadd.s32 1, %s845_s16  ;;  %s40_s21 = sadd.s32 1, %s837_s14 }
   0x8   : > { %p33_p0 = scmp.ge.s32.totalorder %s31_s20, 2  ;;  %p47_p1 = scmp.ne.s32.totalorder %s837_s14, %s833_s13 }
   0x9   : > { %p48_p2 = scmp.eq.s32.totalorder %s849_s17, 0  ;;  %p53_p3 = scmp.ne.s32.totalorder %s833_s13, %s829_s12 }
   0xa   : > { %s1162_s20 = smov (%p33_p0, %s31_s20), 0  ;;  %p54_p5 = scmp.eq.s32.totalorder %s645_s18, 0 }
   0xb   : > { %p919_p4 = por %p48_p2, %p47_p1  ;;  %s35_s23 = ssub.s32 %s845_s16, %s1162_s20 }
   0xc   : > { %p126_p6 = scmp.eq.s32.totalorder %s645_s18, 1  ;;  %p38_p7 = scmp.eq.s32.totalorder %s35_s23, 0 }
   0xd   : > { %p925_p8 = por %p54_p5, %p53_p3  ;;  %p132_p10 = scmp.eq.s32.totalorder %s646_s19, 1 }
   0xe   : > { %p929_p9 = por %p126_p6, %p47_p1  ;;  %p674_p13 = scmp.lt.s32.totalorder %s849_s17, 2 }
   0xf   : > { %s934_s26 = scalar_select %p38_p7, %s837_s14, %s40_s21  }
  0x10   : > { %s1149_s25 = scalar_select %p929_p9, 1, 0 }
  0x11   : > { %p936_p11 = por %p132_p10, %p53_p3  ;;  %s155_s28 = sand.u32 1, %s837_s14  }
  0x12   : > { %s649_s29 = sshll.u32 %s155_s28, 6  ;;  %s661_s30 = sshll.u32 %s845_s16, 10 }
  0x13   : > { %s1150_s27 = scalar_select %p936_p11, 1, 0 }
  0x14   : > { %s947_s6 = scalar_lea.hbm %s1142_s0, %s661_s30  ;;  %s159_s7 = scalar_lea.vmem [#allocation5], %s649_s29 }
  0x15   : > { %s167_s8 = sshll.u32 %s159_s7, 4  ;;  %p953_p0 = pnand %p674_p13, %p919_p4  ;;  %s949_s8 = int_to_ptr.vmem [resolvable:$true] %s167_s8 }
  0x16   : > { %s958_s10 = scalar_lea.sflag [#allocation6], %s155_s28  ;;  %s737_s11 = scalar_lea.hbm %s947_s6, 1024 }
  0x17   : > { %p738_p2 = scmp.ne.s32.totalorder %s947_s6, %s737_s11  ;;  %p739_p3 = pneg %p953_p0 }
  0x18   : > { %s742_s21 = scalar_lea.hbm %s1142_s0, 2048  ;;  %p743_p4 = scmp.lt.u32.totalorder %s947_s6, %s1142_s0 }
  0x19   : > { %p740_p5 = pnand %p739_p3, %p738_p2  ;;  %p744_p7 = scmp.lt.u32.totalorder %s742_s21, %s737_s11 }
  0x1a   : > { %p746_p13 = scmp.lt.u32.totalorder %s737_s11, %s947_s6 }
  0x1b   : > { %p741_p6 = pneg %p740_p5  ;;  %p745_p10 = por %p744_p7, %p743_p4 }
  0x1d   : > { %p747_p12 = por %p746_p13, %p745_p10 }
  0x1f   : > { %p748_p1 = pnand %p747_p12, %p741_p6 }
  0x21   : > { %751 = shalt.err (!%p748_p1)
}
  0x22   : > { %s752_s28 = scalar_lea.vmem %s949_s8, 1024  ;;  %s851_s29 = smov [#allocation5]  }
  0x23   : > { %p753_p2 = scmp.ne.s32.totalorder %s949_s8, %s752_s28  ;;  %s757_s30 = sshll.u32 %s851_s29, 4  ;;  %s758_s30 = int_to_ptr.vmem [resolvable:$false] %s757_s30 }
  0x24   : > { %s759_s4 = scalar_lea.vmem %s758_s30, 2048  ;;  %p760_p9 = scmp.lt.s32.totalorder %s949_s8, %s758_s30 }
  0x25   : > { %p755_p5 = pnand %p753_p2, %p739_p3  ;;  %p761_p4 = scmp.lt.s32.totalorder %s759_s4, %s752_s28 }
  0x27   : > { %p756_p11 = pneg %p755_p5  ;;  %p762_p7 = por %p761_p4, %p760_p9 }
  0x29   : > { %p763_p10 = pnand %p762_p7, %p756_p11 }
  0x2b   : > { %766 = shalt.err (!%p763_p10)
}
  0x2c   : > { %s852_s5 = smov 128   ;;  %s853_s7 = smov 8  }
  0x2d   : > { %669 = dma.hbm_to_vmem [thread:$0]  (!%p953_p0), %s947_s6, 1024, %s949_s8, %s958_s10, %s852_s5, %s852_s5, %s853_s7  }
  0x2e   : > { %p185_p12 = scmp.lt.s32.totalorder %s849_s17, 3  ;;  %p1152_p1 = scmp.ge.s32.totalorder %s849_s17, 1 }
  0x30   : > { %p186_p3 = pnand %p1152_p1, %p185_p12 }
  0x31   : > { %s990_s11 = sand.u32 (!%p186_p3), 1, %s833_s13  }
  0x32   : > { %189 = sbr.rel (%p186_p3) target bundleno = 818 (0x332), region = 32  ;;  %s653_s18 = sshll.u32 (!%p186_p3), %s990_s11, 6 }
  0x33   : > { %s192_s19 = scalar_lea.sflag (!%p186_p3), [#allocation6], %s990_s11  ;;  %s195_s21 = scalar_lea.vmem (!%p186_p3), [#allocation5], %s653_s18 }
  0x39   : > { %820 = dma.done.wait (%p925_p8), %s192_s19, 1024  }
  0x3a   : > { %822 = vsyncadd (%p925_p8), %s192_s19, 4294966272  ;;  %vm240_vm0 = vcmask 261120   ;;  %v998_v0 = vld [vmem:[%s195_s21] sm:$0xff]  ;;  %v656_v1 = vld [vmem:[%s1144_s2] ss:$0 sm:$0xff]  ;;  %vm237_vm1 = vcmask 7168   ;;  %v300_v26 = vlaneseq }
  0x3b   : > { %v1003_v2 = vld [vmem:[%s195_s21 + $0x10] sm:$0xff]  ;;  %v258_v3 = vmul.f32 %v656_v1, %v998_v0  ;;  %v1007_v5 = vld [vmem:[%s195_s21 + $0x8] sm:$0xff]  ;;  %v1009_v6 = vld [vmem:[%s195_s21 + $0x18] sm:$0xff]  ;;  %v854_v25 = vmov -inf   ;;  %p226_p8 = scmp.lt.s32.totalorder %s841_s15, 1  ;;  %vm334_vm2 = vcmask 1041409  }
  0x3c   : > { %v260_v4 = vmul.f32 %v656_v1, %v1003_v2  ;;  %v259_v7 = vmul.f32 %v656_v1, %v1007_v5  ;;  %v261_v8 = vmul.f32 %v656_v1, %v1009_v6  ;;  %v1013_v9 = vld [vmem:[%s195_s21 + $0x20] sm:$0xff]  ;;  %v1015_v10 = vld [vmem:[%s195_s21 + $0x28] sm:$0xff]  ;;  %v1023_v17 = vld [vmem:[%s195_s21 + $0x30] sm:$0xff]  ;;  %238 = vst.msk [vmem:[#allocation2] sm:$0xff] %vm237_vm1, %v854_v25  ;;  %v301_v27 = vand.u32 127, %v300_v26  ;;  %s654_s28 = sshll.u32 %s990_s11, 3 }
  0x3d   : > { %v267_v11 = vsel %vm240_vm0, %v258_v3, 0.0  ;;  %v262_v15 = vmul.f32 %v656_v1, %v1013_v9  ;;  %v263_v16 = vmul.f32 %v656_v1, %v1015_v10  ;;  %v1025_v18 = vld [vmem:[%s195_s21 + $0x38] sm:$0xff]  ;;  %v264_v21 = vmul.f32 %v656_v1, %v1023_v17  ;;  %s227_s24 = scalar_select %p226_p8, %s841_s15, 1 }
  0x3e   : > { %v273_v12 = vsel %vm240_vm0, %v260_v4, 0.0  ;;  %268 = vadd.xlane.f32.xlu0 %v267_v11  ;;  %v270_v13 = vsel %vm240_vm0, %v259_v7, 0.0  ;;  %v276_v14 = vsel %vm240_vm0, %v261_v8, 0.0  ;;  %v265_v22 = vmul.f32 %v656_v1, %v1025_v18  ;;  %s658_s29 = sshll.u32 %s841_s15, 7  ;;  %s224_s30 = scalar_lea.vmem [#allocation8], %s654_s28 }
  0x3f   : > { %274 = vadd.xlane.f32.xlu1 %v273_v12  ;;  %v279_v19 = vsel %vm240_vm0, %v262_v15, 0.0  ;;  %v282_v20 = vsel %vm240_vm0, %v263_v16, 0.0  ;;  %v285_v23 = vsel %vm240_vm0, %v264_v21, 0.0  ;;  %v1034_v28 = vshrl.u32 %v300_v26, 7  ;;  %s655_s9 = sshll.u32 %s227_s24, 3  ;;  %s550_s4 = sshll.u32 %s224_s30, 4  ;;  %s1094_s4 = int_to_ptr.vmem [resolvable:$true] %s550_s4 }
  0x40   : > { %v288_v24 = vsel %vm240_vm0, %v265_v22, 0.0  ;;  %vm336_vm3 = vcmask 1042434   ;;  %vm338_vm4 = vcmask 1043459   ;;  %vm340_vm5 = vcmask 1044484   ;;  %s232_s23 = scalar_lea.vmem %s1143_s1, %s655_s9  ;;  %s1092_s18 = scalar_lea.hbm %s1145_s3, %s658_s29 }
  0x41   : > { %v304_v31 = vsub.s32 %v301_v27, %v1034_v28  ;;  %vm342_vm6 = vcmask 1045509   ;;  %v250_v46 = vld [vmem:[%s232_s23] sm:$0xff]  ;;  %vm344_vm7 = vcmask 1046534   ;;  %vm346_vm8 = vcmask 1047559   ;;  %s537_s19 = scalar_lea.sflag [#allocation7], %s990_s11  ;;  %s767_s21 = scalar_lea.vmem %s1094_s4, 128 }
  0x42   : > { %271 = vadd.xlane.f32.xlu0 %v270_v13  ;;  %vm291_vm9 = vcmp.eq.s32.totalorder %v250_v46, 0  ;;  %vm350_vm10 = vcmp.lt.s32.totalorder %v250_v46, 0  ;;  %vm353_vm11 = vcmask 64512   ;;  %v855_v57 = vmov 0   ;;  %p768_p9 = scmp.ne.s32.totalorder %s1094_s4, %s767_s21  ;;  %p1153_p11 = scmp.ne.s32.totalorder %s1149_s25, 0 }
  0x43   : > { %277 = vadd.xlane.f32.xlu1 %v276_v14  ;;  %730 = vset.pattern.permute.xlu0 %v855_v57  ;;  %v856_v58 = vmov 0.0   ;;  %v352_v59 = vld [vmem:[#allocation2] sm:$0xff]  ;;  %v386_v4 = vsub.s32 1, %v1034_v28  ;;  %v393_v12 = vsub.s32 2, %v1034_v28  ;;  %v400_v14 = vsub.s32 3, %v1034_v28  ;;  %s857_s15 = smov [#allocation8]  }
  0x44   : > { %729 = vset.pattern.permute.xlu1 %v855_v57  ;;  %239 = vst.msk [vmem:[#allocation3] sm:$0xff] %vm237_vm1, %v856_v58  ;;  %v421_v21 = vsub.s32 6, %v1034_v28  ;;  %v414_v26 = vsub.s32 5, %v1034_v28  ;;  %p769_p0 = pnand %p768_p9, %p1153_p11  ;;  %s771_s6 = sshll.u32 %s857_s15, 4  ;;  %s772_s6 = int_to_ptr.vmem [resolvable:$false] %s771_s6 }
  0x45   : > { %241 = vst.msk [vmem:[#allocation4] sm:$0xff] %vm240_vm0, %v856_v58  ;;  %s773_s8 = scalar_lea.vmem %s772_s6, 256  ;;  %p774_p13 = scmp.lt.s32.totalorder %s1094_s4, %s772_s6 }
  0x46   : > { %280 = vadd.xlane.f32.xlu0 %v279_v19  ;;  %v407_v19 = vsub.s32 4, %v1034_v28  ;;  %p770_p6 = pneg %p769_p0  ;;  %p775_p2 = scmp.lt.s32.totalorder %s773_s8, %s767_s21 }
  0x47   : > { %283 = vadd.xlane.f32.xlu1 %v282_v20 }
  0x48   : > { %p776_p5 = por %p775_p2, %p774_p13 }
  0x4a   : > { %286 = vadd.xlane.f32.xlu0 %v285_v23  ;;  %v379_v23 = vsub.s32 0, %v1034_v28  ;;  %p777_p4 = pnand %p776_p5, %p770_p6 }
  0x4b   : > { %289 = vadd.xlane.f32.xlu1 %v288_v24 }
  0xcb   : > { %v269_v29 = vpop.xlane.xlu0 %268 }
  0xcc   : > { %v275_v30 = vpop.xlane.xlu1 %274  ;;  %v305_v34 = vrot.slane %v269_v29, %v304_v31  ;;  %v428_v29 = vsub.s32 7, %v1034_v28 }
  0xcd   : > { %v313_v37 = vrot.slane %v275_v30, %v304_v31 }
  0xcf   : > { %v272_v32 = vpop.xlane.xlu0 %271 }
  0xd0   : > { %v278_v33 = vpop.xlane.xlu1 %277  ;;  %v309_v35 = vrot.slane %v272_v32, %v304_v31 }
  0xd1   : > { %v317_v36 = vrot.slane %v278_v33, %v304_v31 }
  0xd2   : > { %v335_v38 = vsel %vm334_vm2, %v309_v35, %v305_v34 }
  0xd3   : > { %v337_v39 = vsel %vm336_vm3, %v313_v37, %v335_v38  ;;  %v281_v40 = vpop.xlane.xlu0 %280 }
  0xd4   : > { %v284_v41 = vpop.xlane.xlu1 %283  ;;  %v339_v42 = vsel %vm338_vm4, %v317_v36, %v337_v39  ;;  %v321_v43 = vrot.slane %v281_v40, %v304_v31 }
  0xd5   : > { %v325_v44 = vrot.slane %v284_v41, %v304_v31  ;;  %v369_v41 = vld [vmem:[#allocation3] sm:$0xff] }
  0xd6   : > { %v341_v45 = vsel %vm340_vm5, %v321_v43, %v339_v42 }
  0xd7   : > { %v287_v47 = vpop.xlane.xlu0 %286  ;;  %v343_v51 = vsel %vm342_vm6, %v325_v44, %v341_v45 }
  0xd8   : > { %v290_v48 = vpop.xlane.xlu1 %289  ;;  %v329_v49 = vrot.slane %v287_v47, %v304_v31 }
  0xd9   : > { %v333_v50 = vrot.slane %v290_v48, %v304_v31 }
  0xda   : > { %v345_v52 = vsel %vm344_vm7, %v329_v49, %v343_v51 }
  0xdb   : > { %v347_v53 = vsel %vm346_vm8, %v333_v50, %v345_v52 }
  0xdc   : > { %v349_v54 = vsel %vm291_vm9, -1e+09, %v347_v53 }
  0xdd   : > { %v351_v55 = vsel %vm350_vm10, -inf, %v349_v54 }
  0xde   : > { %v354_v56 = vsel %vm353_vm11, %v351_v55, -inf }
  0xdf   : > { %355 = vmax.xlane.f32.xlu0 %v354_v56 }
 0x16c   : > { %v356_v60 = vpop.xlane.xlu0 %355 }
 0x16d   : > { %v357_v61 = vmax.f32 %v352_v59, %v356_v60 }
 0x16f   : > { %v358_v62 = vsub.f32 %v352_v59, %v357_v61  ;;  %522 = vst.msk [vmem:[#allocation2] sm:$0xff] %vm237_vm1, %v357_v61  ;;  %363 = vperm.xlu1 %729, %v357_v61  }
 0x171   : > { %v359_v15 = vmul.f32 1.442695, %v358_v62 }
 0x1ee   : > { %v364_v63 = vpop.permute.xlu1 %363 }
 0x1ef   : > { %v366_v1 = vsub.f32 %v351_v55, %v364_v63 }
 0x1f1   : > { %v367_v3 = vmul.f32 1.442695, %v366_v1 }
 0x1f3   : > { %731 = vpow2.f32 %v367_v3 }
 0x1f4   : > { %733 = vpow2.f32 %v359_v15 }
 0x1fd   : > { %v732_v7 = vpop.eup %731 }
 0x1fe   : > { %v371_v8 = vsel %vm353_vm11, %v732_v7, 0.0  ;;  %v387_v11 = vrot.slane %v732_v7, %v386_v4  ;;  %v394_v13 = vrot.slane %v732_v7, %v393_v12  ;;  %v401_v16 = vrot.slane %v732_v7, %v400_v14  ;;  %v734_v24 = vpop.eup %733 }
 0x1ff   : > { %372 = vadd.xlane.f32.xlu0 %v371_v8  ;;  %v408_v20 = vrot.slane %v732_v7, %v407_v19  ;;  %v422_v22 = vrot.slane %v732_v7, %v421_v21  ;;  %v380_v25 = vrot.slane %v732_v7, %v379_v23  ;;  %v415_v27 = vrot.slane %v732_v7, %v414_v26 }
 0x200   : > { %389 = vbcast.lane.b32.xlu1 %v387_v11, 256  ;;  %v429_v30 = vrot.slane %v732_v7, %v428_v29  ;;  %v370_v46 = vmul.f32 %v734_v24, %v369_v41 }
 0x204   : > { %396 = vbcast.lane.b32.xlu1 %v394_v13, 256 }
 0x208   : > { %403 = vbcast.lane.b32.xlu1 %v401_v16, 256 }
 0x20c   : > { %410 = vbcast.lane.b32.xlu1 %v408_v20, 256 }
 0x210   : > { %424 = vbcast.lane.b32.xlu1 %v422_v22, 256 }
 0x214   : > { %500 = vperm.xlu1 %729, %v734_v24  }
 0x215   : > { %382 = vbcast.lane.b32.xlu0 %v380_v25, 256 }
 0x219   : > { %417 = vbcast.lane.b32.xlu0 %v415_v27, 256 }
 0x21d   : > { %431 = vbcast.lane.b32.xlu0 %v429_v30, 256 }
 0x272   : > { %v390_v31 = vpop.permute.xlu1 %389 }
 0x273   : > { %v434_v35 = vmul.f32 %v390_v31, %v1007_v5 }
 0x275   : > { %v448_v39 = vsel %vm240_vm0, %v434_v35, 0.0 }
 0x276   : > { %v397_v32 = vpop.permute.xlu1 %396  ;;  %v449_v43 = vrot.slane %v448_v39, 4 }
 0x277   : > { %v435_v36 = vmul.f32 %v397_v32, %v1003_v2 }
 0x279   : > { %v455_v28 = vsel %vm240_vm0, %v435_v36, 0.0 }
 0x27a   : > { %v404_v33 = vpop.permute.xlu1 %403  ;;  %v456_v5 = vrot.slane %v455_v28, 4 }
 0x27b   : > { %v436_v37 = vmul.f32 %v404_v33, %v1009_v6 }
 0x27c   : > { %v457_v50 = vadd.f32 %v456_v5, %v455_v28 }
 0x27d   : > { %v462_v42 = vsel %vm240_vm0, %v436_v37, 0.0 }
 0x27e   : > { %v411_v34 = vpop.permute.xlu1 %410  ;;  %v463_v2 = vrot.slane %v462_v42, 4 }
 0x27f   : > { %v437_v38 = vmul.f32 %v411_v34, %v1013_v9  ;;  %v450_v9 = vadd.f32 %v449_v43, %v448_v39 }
 0x280   : > { %v464_v51 = vadd.f32 %v463_v2, %v462_v42 }
 0x281   : > { %v469_v44 = vsel %vm240_vm0, %v437_v38, 0.0  ;;  %v451_v56 = vrot.slane %v450_v9, 2 }
 0x282   : > { %v425_v40 = vpop.permute.xlu1 %424  ;;  %v470_v6 = vrot.slane %v469_v44, 4  ;;  %v465_v58 = vrot.slane %v464_v51, 2 }
 0x283   : > { %v439_v45 = vmul.f32 %v425_v40, %v1023_v17  ;;  %v458_v17 = vrot.slane %v457_v50, 2  ;;  %v452_v1 = vadd.f32 %v451_v56, %v450_v9 }
 0x284   : > { %v471_v53 = vadd.f32 %v470_v6, %v469_v44  ;;  %v466_v11 = vadd.f32 %v465_v58, %v464_v51 }
 0x285   : > { %v483_v49 = vsel %vm240_vm0, %v439_v45, 0.0  ;;  %v459_v7 = vadd.f32 %v458_v17, %v457_v50  ;;  %v453_v19 = vrot.slane %v452_v1, 1  ;;  %v497_v45 = vld [vmem:[#allocation4] sm:$0xff] }
 0x286   : > { %v484_v54 = vrot.slane %v483_v49, 4  ;;  %v472_v61 = vrot.slane %v471_v53, 2  ;;  %v467_v23 = vrot.slane %v466_v11, 1 }
 0x287   : > { %v460_v22 = vrot.slane %v459_v7, 1  ;;  %v454_v30 = vadd.f32 %v453_v19, %v452_v1 }
 0x288   : > { %v485_v62 = vadd.f32 %v484_v54, %v483_v49  ;;  %v473_v14 = vadd.f32 %v472_v61, %v471_v53  ;;  %v468_v35 = vadd.f32 %v467_v23, %v466_v11 }
 0x289   : > { %v461_v34 = vadd.f32 %v460_v22, %v459_v7 }
 0x28a   : > { %v486_v15 = vrot.slane %v485_v62, 2  ;;  %v474_v27 = vrot.slane %v473_v14, 1 }
 0x28c   : > { %v373_v47 = vpop.xlane.xlu0 %372  ;;  %v487_v29 = vadd.f32 %v486_v15, %v485_v62  ;;  %v475_v39 = vadd.f32 %v474_v27, %v473_v14 }
 0x28d   : > { %v374_v48 = vadd.f32 %v373_v47, %v370_v46 }
 0x28e   : > { %v488_v40 = vrot.slane %v487_v29, 1 }
 0x28f   : > { %376 = vst.msk [vmem:[#allocation3] sm:$0xff] %vm237_vm1, %v374_v48 }
 0x290   : > { %v383_v52 = vpop.permute.xlu0 %382  ;;  %v489_v47 = vadd.f32 %v488_v40, %v487_v29 }
 0x291   : > { %v433_v55 = vmul.f32 %v383_v52, %v998_v0 }
 0x293   : > { %v441_v57 = vsel %vm240_vm0, %v433_v55, 0.0  ;;  %v501_v5 = vpop.permute.xlu1 %500 }
 0x294   : > { %v442_v59 = vrot.slane %v441_v57, 4  ;;  %v418_v60 = vpop.permute.xlu0 %417  ;;  %v503_v48 = vmul.f32 %v501_v5, %v497_v45 }
 0x295   : > { %v438_v63 = vmul.f32 %v418_v60, %v1015_v10 }
 0x296   : > { %v443_v3 = vadd.f32 %v442_v59, %v441_v57  ;;  %v526_v4 = vld [vmem:[#allocation3] sm:$0xff] }
 0x297   : > { %v476_v8 = vsel %vm240_vm0, %v438_v63, 0.0  ;;  %735 = vrcp.f32 %v526_v4 }
 0x298   : > { %v444_v0 = vrot.slane %v443_v3, 2  ;;  %v477_v12 = vrot.slane %v476_v8, 4  ;;  %v432_v13 = vpop.permute.xlu0 %431 }
 0x299   : > { %v440_v16 = vmul.f32 %v432_v13, %v1025_v18 }
 0x29a   : > { %v445_v20 = vadd.f32 %v444_v0, %v443_v3  ;;  %v478_v21 = vadd.f32 %v477_v12, %v476_v8 }
 0x29b   : > { %v490_v10 = vsel %vm240_vm0, %v440_v16, 0.0 }
 0x29c   : > { %v446_v24 = vrot.slane %v445_v20, 1  ;;  %v479_v25 = vrot.slane %v478_v21, 2  ;;  %v491_v26 = vrot.slane %v490_v10, 4 }
 0x29e   : > { %v447_v31 = vadd.f32 %v446_v24, %v445_v20  ;;  %v480_v32 = vadd.f32 %v479_v25, %v478_v21  ;;  %v492_v33 = vadd.f32 %v491_v26, %v490_v10 }
 0x2a0   : > { %v512_v18 = vsel %vm334_vm2, %v454_v30, %v447_v31  ;;  %v481_v36 = vrot.slane %v480_v32, 1  ;;  %v493_v37 = vrot.slane %v492_v33, 2 }
 0x2a1   : > { %v736_v38 = vpop.eup %735  ;;  %v513_v28 = vsel %vm336_vm3, %v461_v34, %v512_v18 }
 0x2a2   : > { %v514_v41 = vsel %vm338_vm4, %v468_v35, %v513_v28  ;;  %v482_v42 = vadd.f32 %v481_v36, %v480_v32  ;;  %v494_v43 = vadd.f32 %v493_v37, %v492_v33  ;;  %531 = vperm.xlu0 %730, %v736_v38  }
 0x2a3   : > { %v515_v44 = vsel %vm340_vm5, %v475_v39, %v514_v41 }
 0x2a4   : > { %v516_v46 = vsel %vm342_vm6, %v482_v42, %v515_v44  ;;  %v495_v2 = vrot.slane %v494_v43, 1 }
 0x2a5   : > { %v517_v9 = vsel %vm344_vm7, %v489_v47, %v516_v46 }
 0x2a6   : > { %v496_v6 = vadd.f32 %v495_v2, %v494_v43 }
 0x2a8   : > { %v518_v49 = vsel %vm346_vm8, %v496_v6, %v517_v9 }
 0x2a9   : > { %v520_v50 = vadd.f32 %v518_v49, %v503_v48 }
 0x2ab   : > { %521 = vst.msk [vmem:[#allocation4] sm:$0xff] %vm240_vm0, %v520_v50 }
 0x2b2   : > { %v528_v51 = vld [vmem:[#allocation4] sm:$0xff] }
 0x321   : > { %v532_v52 = vpop.permute.xlu0 %531 }
 0x322   : > { %v534_v53 = vmul.f32 %v532_v52, %v528_v51 }
 0x324   : > { %535 = vst.msk [vmem:[%s224_s30] sm:$0xff] %vm240_vm0, %v534_v53 }
 0x325   : > { %780 = shalt.err (!%p777_p4)
}
 0x326   : > { %s781_s11 = scalar_lea.hbm %s1092_s18, 128  ;;  %s785_s10 = scalar_lea.hbm %s1145_s3, 256 }
 0x327   : > { %p782_p7 = scmp.ne.s32.totalorder %s1092_s18, %s781_s11  ;;  %p786_p1 = scmp.lt.u32.totalorder %s1092_s18, %s1145_s3 }
 0x328   : > { %p787_p3 = scmp.lt.u32.totalorder %s785_s10, %s781_s11  ;;  %p789_p9 = scmp.lt.u32.totalorder %s781_s11, %s1092_s18 }
 0x329   : > { %p783_p10 = pnand %p782_p7, %p1153_p11 }
 0x32a   : > { %p788_p8 = por %p787_p3, %p786_p1 }
 0x32b   : > { %p784_p12 = pneg %p783_p10 }
 0x32c   : > { %p790_p0 = por %p789_p9, %p788_p8 }
 0x32e   : > { %p791_p6 = pnand %p790_p0, %p784_p12 }
 0x330   : > { %794 = shalt.err (!%p791_p6)
}
 0x331   : > { %664 = dma.vmem_to_hbm [thread:$0]  (%p1153_p11), %s1094_s4, 128, %s1092_s18, %s537_s19  }
 0x332 PF: > { %s562_s28 = sand.u32 1, %s829_s12   ;;  %p1154_p13 = scmp.ne.s32.totalorder %s1150_s27, 0 }
 0x333   : > { %p1155_p2 = scmp.ge.s32.totalorder %s849_s17, 2  ;;  %s563_s29 = scalar_lea.sflag [#allocation7], %s562_s28 }
 0x335   : > { %p671_p5 = pnand %p1155_p2, %p1154_p13 }
 0x337   : > { %824 = dma.done.wait (!%p671_p5), %s563_s29, 128  }
 0x338   : > { %826 = vsyncadd (!%p671_p5), %s563_s29, 4294967168  ;;  %s19_s17 = sadd.s32 1, %s849_s17   ;;  %s1156_s12 = smov %s833_s13 }
 0x339   : > { %p16_p4 = scmp.ge.s32.totalorder %s19_s17, 4   ;;  %s1157_s13 = smov %s837_s14 }
 0x33a   : > { %s1158_s14 = smov %s934_s26  ;;  %s1159_s15 = smov %s845_s16 }
 0x33b   : > { %s1160_s16 = smov %s1162_s20  ;;  %18 = sbr.rel (!%p16_p4) target bundleno = 6 (0x6), region = 88 }
 0x342   :  { %568 = vsyncpa [#allocation6], 1 }
 0x343   :  { %570 = vsyncpa [#allocation6 + $0x1], 1 }
 0x344   :  { %571 = vsyncpa [#allocation7], 1 }
 0x345   :  { %573 = vsyncpa [#allocation7 + $0x1], 1 }

</bundles_post_ra>
